<compile_context>
chip_gen: v7x
topology: tpu7x:2x2x1
jax: 0.10.0
libtpu: 0.0.40
codegen_flags: <defaults>
</compile_context>

<pallas_src>
import functools

import jax
import jax.numpy as jnp
from jax.experimental import pallas as pl
from jax.experimental.pallas import tpu as pltpu

BN_EPS = 1e-5
LANE = 128


def _decoder_fused_kernel(n_hidden, h_ref, *refs):
    """Fused decoder: (Linear -> BN(train) -> ReLU) x n_hidden -> Linear -> sigmoid.

    refs layout: [w_0, b_0, gamma_0, beta_0, ..., w_last, b_last, out_ref]
    All intermediates stay in VMEM / vregs; only the final result is stored.
    """
    out_ref = refs[-1]
    params = refs[:-1]

    h = h_ref[...]                                                # (B, D_in) f32
    idx = 0
    for _ in range(n_hidden):
        w = params[idx][...]                                      # (D_in, D_out)
        b = params[idx + 1][...]                                  # (1, D_out)
        gamma = params[idx + 2][...]                              # (1, D_out)
        beta = params[idx + 3][...]                               # (1, D_out)
        idx += 4

        z = jnp.dot(h, w, preferred_element_type=jnp.float32) + b  # MXU, f32 acc

        # BatchNorm1d (training mode: batch mean, biased variance) folded into
        # a single per-feature scale/shift, then ReLU.
        mean = jnp.mean(z, axis=0, keepdims=True)                 # (1, D_out)
        var = jnp.mean((z - mean) * (z - mean), axis=0, keepdims=True)
        s = gamma * jax.lax.rsqrt(var + BN_EPS)                   # scale
        t = beta - mean * s                                       # shift
        h = jnp.maximum(z * s + t, 0.0)                           # one FMA + ReLU

    # Output layer: Linear -> sigmoid (weight columns already lane-padded).
    w = params[idx][...]
    b = params[idx + 1][...]
    z = jnp.dot(h, w, preferred_element_type=jnp.float32) + b
    out_ref[...] = jax.nn.sigmoid(z)                              # lane-dense store


def decoder_forward(h, params):
    """Run the fused decoder kernel. `params` is a tuple of per-layer dicts."""
    n_layers = len(params)
    n_hidden = n_layers - 1
    B = h.shape[0]
    d_out = params[-1]["w"].shape[1]
    d_pad = ((d_out + LANE - 1) // LANE) * LANE                   # lane-dense output

    flat = [h]
    for i in range(n_hidden):
        p = params[i]
        flat += [p["w"], p["b"], p["gamma"], p["beta"]]

    p_last = params[-1]
    w_last, b_last = p_last["w"], p_last["b"]
    if d_pad != d_out:
        # Zero-pad output columns so the final store is an unmasked, 128-wide vst.
        w_last = jnp.pad(w_last, ((0, 0), (0, d_pad - d_out)))
        b_last = jnp.pad(b_last, ((0, 0), (0, d_pad - d_out)))
    flat += [w_last, b_last]

    vmem = pl.BlockSpec(memory_space=pltpu.MemorySpace.VMEM)
    out_padded = pl.pallas_call(
        functools.partial(_decoder_fused_kernel, n_hidden),
        out_shape=jax.ShapeDtypeStruct((B, d_pad), jnp.float32),
        in_specs=[vmem] * len(flat),
        out_specs=vmem,
        # Toy sizes: whole arrays fit trivially in VMEM on v5e/v6e/v7x; no grid.
        # TODO(synk): for real VAE dims, tile over D_out with a ("parallel",)
        # grid and set vmem_limit_bytes to stay within v7x's 64 MiB VMEM.
    )(*flat)

    return out_padded[:, :d_out]


decoder_forward_jit = jax.jit(decoder_forward)


def init_decoder_params(key, dims):
    """dims: list of (in_dim, out_dim) per layer, like the `dimension` DataFrame rows."""
    params = []
    for i, (din, dout) in enumerate(dims):
        key, kw, kb = jax.random.split(key, 3)
        # PyTorch nn.Linear default init: U(-1/sqrt(in), 1/sqrt(in)).
        bound = 1.0 / jnp.sqrt(jnp.float32(din))
        w = jax.random.uniform(kw, (din, dout), jnp.float32, -bound, bound)  # pre-transposed
        b = jax.random.uniform(kb, (1, dout), jnp.float32, -bound, bound)
        layer = {"w": w, "b": b}
        if i < len(dims) - 1:
            # BatchNorm1d defaults: gamma=1, beta=0.
            layer["gamma"] = jnp.ones((1, dout), jnp.float32)
            layer["beta"] = jnp.zeros((1, dout), jnp.float32)
        params.append(layer)
    return params


def decoder_reference(h, params):
    """Pure-JAX reference for correctness check."""
    for i in range(len(params) - 1):
        p = params[i]
        z = h @ p["w"] + p["b"]
        mean = jnp.mean(z, axis=0, keepdims=True)
        var = jnp.mean((z - mean) ** 2, axis=0, keepdims=True)
        z = (z - mean) * jax.lax.rsqrt(var + BN_EPS) * p["gamma"] + p["beta"]
        h = jnp.maximum(z, 0.0)
    p = params[-1]
    return jax.nn.sigmoid(h @ p["w"] + p["b"])


if __name__ == "__main__":
    key = jax.random.PRNGKey(0)
    k_in, k_params = jax.random.split(key)

    # n_layers = 2; dimension table: layer 0: 16 -> 32, layer 1: 32 -> 64.
    dims = [(16, 32), (32, 64)]
    batch = 8

    h = jax.random.normal(k_in, (batch, dims[0][0]), jnp.float32)
    params = tuple(init_decoder_params(k_params, dims))

    out = decoder_forward_jit(h, params)
    out = jax.block_until_ready(out)

    ref = decoder_reference(h, params)
    assert out.shape == (batch, dims[-1][1])
    assert jnp.allclose(out, ref, atol=1e-5, rtol=1e-5), "mismatch vs reference"

    print("KERNEL_OK")
</pallas_src>

<mosaic_0001>
module attributes {stable_mosaic.version = 11 : i64} {
  func.func @_decoder_fused_kernel(%arg0: memref<8x16xf32, #tpu.memory_space<vmem>>, %arg1: memref<16x32xf32, #tpu.memory_space<vmem>>, %arg2: memref<1x32xf32, #tpu.memory_space<vmem>>, %arg3: memref<1x32xf32, #tpu.memory_space<vmem>>, %arg4: memref<1x32xf32, #tpu.memory_space<vmem>>, %arg5: memref<32x128xf32, #tpu.memory_space<vmem>>, %arg6: memref<1x128xf32, #tpu.memory_space<vmem>>, %arg7: memref<8x128xf32, #tpu.memory_space<vmem>>) attributes {dimension_semantics = [], scalar_prefetch = 0 : i64, scratch_operands = 0 : i64, tpu.core_type = #tpu.core_type<tc>} {
    %c0 = arith.constant 0 : index
    %c0_0 = arith.constant 0 : index
    %0 = vector.load %arg0[%c0, %c0_0] : memref<8x16xf32, #tpu.memory_space<vmem>>, vector<8x16xf32>
    %c0_1 = arith.constant 0 : index
    %c0_2 = arith.constant 0 : index
    %1 = vector.load %arg1[%c0_1, %c0_2] : memref<16x32xf32, #tpu.memory_space<vmem>>, vector<16x32xf32>
    %c0_3 = arith.constant 0 : index
    %c0_4 = arith.constant 0 : index
    %2 = vector.load %arg2[%c0_3, %c0_4] : memref<1x32xf32, #tpu.memory_space<vmem>>, vector<1x32xf32>
    %c0_5 = arith.constant 0 : index
    %c0_6 = arith.constant 0 : index
    %3 = vector.load %arg3[%c0_5, %c0_6] : memref<1x32xf32, #tpu.memory_space<vmem>>, vector<1x32xf32>
    %c0_7 = arith.constant 0 : index
    %c0_8 = arith.constant 0 : index
    %4 = vector.load %arg4[%c0_7, %c0_8] : memref<1x32xf32, #tpu.memory_space<vmem>>, vector<1x32xf32>
    %cst = arith.constant dense<0.000000e+00> : vector<8x32xf32>
    %5 = tpu.matmul %0, %1, %cst {dimension_numbers = #tpu.dot_dimension_numbers<[1], [0], [0], [1], [0, 0, 1, 1], [], []>} : vector<8x16xf32>, vector<16x32xf32>, vector<8x32xf32> -> vector<8x32xf32>
    %6 = vector.broadcast %2 : vector<1x32xf32> to vector<8x32xf32>
    %7 = arith.addf %5, %6 : vector<8x32xf32>
    %cst_9 = arith.constant dense<0.000000e+00> : vector<32xf32>
    %8 = vector.multi_reduction <add>, %7, %cst_9 [0] : vector<8x32xf32> to vector<32xf32>
    %9 = vector.shape_cast %8 : vector<32xf32> to vector<1x32xf32>
    %cst_10 = arith.constant 8.000000e+00 : f32
    %10 = vector.broadcast %cst_10 : f32 to vector<1x32xf32>
    %11 = arith.divf %9, %10 : vector<1x32xf32>
    %12 = vector.broadcast %11 : vector<1x32xf32> to vector<8x32xf32>
    %13 = arith.subf %7, %12 : vector<8x32xf32>
    %14 = vector.broadcast %11 : vector<1x32xf32> to vector<8x32xf32>
    %15 = arith.subf %7, %14 : vector<8x32xf32>
    %16 = arith.mulf %13, %15 : vector<8x32xf32>
    %cst_11 = arith.constant dense<0.000000e+00> : vector<32xf32>
    %17 = vector.multi_reduction <add>, %16, %cst_11 [0] : vector<8x32xf32> to vector<32xf32>
    %18 = vector.shape_cast %17 : vector<32xf32> to vector<1x32xf32>
    %cst_12 = arith.constant 8.000000e+00 : f32
    %19 = vector.broadcast %cst_12 : f32 to vector<1x32xf32>
    %20 = arith.divf %18, %19 : vector<1x32xf32>
    %cst_13 = arith.constant 9.99999974E-6 : f32
    %21 = vector.broadcast %cst_13 : f32 to vector<1x32xf32>
    %22 = arith.addf %20, %21 : vector<1x32xf32>
    %23 = math.rsqrt %22 : vector<1x32xf32>
    %24 = arith.mulf %3, %23 : vector<1x32xf32>
    %25 = arith.mulf %11, %24 : vector<1x32xf32>
    %26 = arith.subf %4, %25 : vector<1x32xf32>
    %27 = vector.broadcast %24 : vector<1x32xf32> to vector<8x32xf32>
    %28 = arith.mulf %7, %27 : vector<8x32xf32>
    %29 = vector.broadcast %26 : vector<1x32xf32> to vector<8x32xf32>
    %30 = arith.addf %28, %29 : vector<8x32xf32>
    %cst_14 = arith.constant 0.000000e+00 : f32
    %31 = vector.broadcast %cst_14 : f32 to vector<8x32xf32>
    %32 = arith.maximumf %30, %31 : vector<8x32xf32>
    %c0_15 = arith.constant 0 : index
    %c0_16 = arith.constant 0 : index
    %33 = vector.load %arg5[%c0_15, %c0_16] : memref<32x128xf32, #tpu.memory_space<vmem>>, vector<32x128xf32>
    %c0_17 = arith.constant 0 : index
    %c0_18 = arith.constant 0 : index
    %34 = vector.load %arg6[%c0_17, %c0_18] : memref<1x128xf32, #tpu.memory_space<vmem>>, vector<1x128xf32>
    %cst_19 = arith.constant dense<0.000000e+00> : vector<8x128xf32>
    %35 = tpu.matmul %32, %33, %cst_19 {dimension_numbers = #tpu.dot_dimension_numbers<[1], [0], [0], [1], [0, 0, 1, 1], [], []>} : vector<8x32xf32>, vector<32x128xf32>, vector<8x128xf32> -> vector<8x128xf32>
    %36 = vector.broadcast %34 : vector<1x128xf32> to vector<8x128xf32>
    %37 = arith.addf %35, %36 : vector<8x128xf32>
    %38 = arith.negf %37 : vector<8x128xf32>
    %39 = math.exp %38 : vector<8x128xf32>
    %cst_20 = arith.constant 1.000000e+00 : f32
    %40 = vector.broadcast %cst_20 : f32 to vector<8x128xf32>
    %41 = arith.addf %40, %39 : vector<8x128xf32>
    %42 = arith.divf %40, %41 : vector<8x128xf32>
    %c0_21 = arith.constant 0 : index
    %c0_22 = arith.constant 0 : index
    %43 = vector.load %arg7[%c0_21, %c0_22] : memref<8x128xf32, #tpu.memory_space<vmem>>, vector<8x128xf32>
    tpu.vector_store %arg7[%c0_21, %c0_22], %42 {strides = array<i32>} : memref<8x128xf32, #tpu.memory_space<vmem>>, vector<8x128xf32>,
    return
  }
}

</mosaic_0001>

<bundles_post_ra>
// kernel: decoder_forward.1
= control target key start
LH: loop header
LB: loop body
LE: loop exit
PB: predicated region body
PF: predicated region fallthrough
CT: control target
= control target key end

     0   :  { %v332_v2 = vmov 0.0|0.0   ;;  %vm333_vm0 = vmmov 0   ;;  %v334_v4 = vmov 0.0   ;;  %s424_s0 = inlined_call_operand.vmem [shape: f32[8,16], index: 0, kind: input, shape index: {}]   ;;  %s425_s1 = inlined_call_operand.vmem [shape: f32[16,32], index: 1, kind: input, shape index: {}]   ;;  %s426_s2 = inlined_call_operand.vmem [shape: f32[1,32], index: 2, kind: input, shape index: {}]   ;;  %s427_s3 = inlined_call_operand.vmem [shape: f32[1,32], index: 3, kind: input, shape index: {}]   ;;  %s428_s4 = inlined_call_operand.vmem [shape: f32[1,32], index: 4, kind: input, shape index: {}]   ;;  %s429_s5 = inlined_call_operand.vmem [shape: f32[32,128], index: 5, kind: input, shape index: {}]   ;;  %s430_s6 = inlined_call_operand.vmem [shape: f32[1,128], index: 6, kind: input, shape index: {}]   ;;  %s431_s7 = inlined_call_operand.hbm [shape: f32[8,128], index: 7, kind: output, shape index: {}]  }
   0x1   :  { %v28_v0 = vld [vmem:[%s425_s1] sm:$0xff]  ;;  %v29_v1 = vld [vmem:[%s425_s1 + $0x8] sm:$0xff]  ;;  %289 = vmatprep.subr.bf16.mxu0 %v332_v2  ;;  %275 = vmatprep.mubr.msk.f32.mxu0 %vm333_vm0, %v334_v4 }
   0x2   :  { %v290_v3 = vpack.c.bf16 %v29_v1, %v28_v0 }
   0x3   :  { %12 = vsyncpa [#allocation3], 0  ;;  %292 = vmatprep.subr.bf16.mxu1 %v332_v2  ;;  %286 = vmatprep.mubr.msk.f32.mxu1 %vm333_vm0, %v334_v4  ;;  %v27_v5 = vld [vmem:[%s424_s0] sm:$0xff]  ;;  %vm39_vm1 = vcmask 130048   ;;  %v154_v7 = vld [vmem:[%s429_s5 + $0x8] sm:$0xff]  ;;  %vm113_vm2 = vcmask 261120   ;;  %v139_v35 = vlaneseq }
   0x4   :  { %291 = vmatpush3.bf16.msra.mxu0 %v290_v3  ;;  %v153_v6 = vld [vmem:[%s429_s5] sm:$0xff]  ;;  %v155_v8 = vld [vmem:[%s429_s5 + $0x10] sm:$0xff]  ;;  %v156_v10 = vld [vmem:[%s429_s5 + $0x18] sm:$0xff] }
   0x5   :  { %v293_v9 = vpack.c.bf16 %v154_v7, %v153_v6  ;;  %v296_v11 = vpack.c.bf16 %v156_v10, %v155_v8  ;;  %v258_v12 = vld [vmem:[%s426_s2] ss:$0 sm:$0xff]  ;;  %v140_v36 = vshrl.u32 %v139_v35, 7 }
   0x6   :  { %v31_v37 = vld [vmem:[%s427_s3] sm:$0x1]  ;;  %s335_s3 = smov [#allocation2]  }
   0x7   :  { %276 = vmatmul.mubr.msk.f32.vlgmr.msra.gmra.mrb[0].mxu0 %vm39_vm1, %v27_v5  ;;  %294 = vmatpush3.bf16.msra.mxu1 %v293_v9  ;;  %v141_v38 = vsub.s32 0, %v140_v36  ;;  %v32_v41 = vld [vmem:[%s428_s4] sm:$0x1]  ;;  %s250_s4 = sshll.u32 %s335_s3, 4  ;;  %s251_s4 = int_to_ptr.vmem [resolvable:$true] %s250_s4 }
   0x8   :  { %295 = vmatprep.subr.bf16.mxu1 %v332_v2  ;;  %v260_v49 = vld [vmem:[%s430_s6] ss:$0 sm:$0xff]  ;;  %s308_s19 = scalar_lea.vmem %s251_s4, 128  ;;  %p313_p1 = scmp.lt.s32.totalorder %s251_s4, %s251_s4 }
   0x9   :  { %p309_p0 = scmp.ne.s32.totalorder %s251_s4, %s308_s19  ;;  %p314_p2 = scmp.lt.s32.totalorder %s308_s19, %s308_s19 }
   0xb   :  { %297 = vmatpush3.bf16.msra.mxu1 %v296_v11  ;;  %p315_p3 = por %p314_p2, %p313_p1 }
   0xd   :  { %p316_p4 = pnand %p315_p3, %p309_p0 }
  0xda   :  { %v109_v13 = vpop.f32.mrb[0].mxu0 }
  0xdb   :  { %v110_v14 = vadd.f32 %v258_v12, %v109_v13  ;;  %v277_v15 = vpop.f32.mrb[1].mxu0 }
  0xdd   :  { %v114_v16 = vsel %vm113_vm2, %v110_v14, 0.0 }
  0xde   :  { %v115_v17 = vrot.slane %v114_v16, 4 }
  0xe0   :  { %v116_v18 = vadd.f32 %v115_v17, %v114_v16 }
  0xe2   :  { %v117_v19 = vrot.slane %v116_v18, 2 }
  0xe4   :  { %v118_v20 = vadd.f32 %v117_v19, %v116_v18 }
  0xe6   :  { %v119_v21 = vrot.slane %v118_v20, 1 }
  0xe8   :  { %v120_v22 = vadd.f32 %v119_v21, %v118_v20 }
  0xea   :  { %v122_v23 = vmul.f32 0.125, %v120_v22 }
  0xec   :  { %v123_v24 = vsub.f32 %v110_v14, %v122_v23 }
  0xee   :  { %v124_v25 = vmul.f32 %v123_v24, %v123_v24 }
  0xf0   :  { %v125_v26 = vsel %vm113_vm2, %v124_v25, 0.0 }
  0xf1   :  { %v126_v27 = vrot.slane %v125_v26, 4 }
  0xf3   :  { %v127_v28 = vadd.f32 %v126_v27, %v125_v26 }
  0xf5   :  { %v128_v29 = vrot.slane %v127_v28, 2 }
  0xf7   :  { %v129_v30 = vadd.f32 %v128_v29, %v127_v28 }
  0xf9   :  { %v130_v31 = vrot.slane %v129_v30, 1 }
  0xfb   :  { %v131_v32 = vadd.f32 %v130_v31, %v129_v30 }
  0xfd   :  { %v132_v33 = vmul.f32 0.125, %v131_v32 }
  0xff   :  { %v133_v34 = vadd.f32 1e-05, %v132_v33 }
 0x101   :  { %302 = vrsqrt.f32 %v133_v34 }
 0x10b   :  { %v303_v39 = vpop.eup %302 }
 0x10c   :  { %v135_v40 = vmul.f32 %v303_v39, %v31_v37 }
 0x10e   :  { %v136_v42 = vmul.f32 %v135_v40, %v122_v23  ;;  %v142_v43 = vrot.slane %v135_v40, %v141_v38 }
 0x110   :  { %v137_v44 = vsub.f32 %v32_v41, %v136_v42  ;;  %v144_v45 = vmul.f32 %v142_v43, %v110_v14 }
 0x112   :  { %v149_v46 = vrot.slane %v137_v44, %v141_v38 }
 0x114   :  { %v151_v47 = vadd.f32 %v149_v46, %v144_v45 }
 0x116   :  { %v152_v48 = vmax.f32 %v151_v47, 0.0 }
 0x118   :  { %287 = vmatmul.mubr.msk.f32.vlgmr.msra.gmra.mrb[0].mxu1 %vm113_vm2, %v152_v48 }
 0x1eb   :  { %v233_v50 = vpop.f32.mrb[0].mxu1 }
 0x1ec   :  { %v234_v51 = vadd.f32 %v260_v49, %v233_v50  ;;  %v288_v52 = vpop.f32.mrb[1].mxu1 }
 0x1ee   :  { %v262_v53 = vmul.f32 -1.442695, %v234_v51 }
 0x1f0   :  { %304 = vpow2.f32 %v262_v53 }
 0x1fa   :  { %v305_v54 = vpop.eup %304 }
 0x1fb   :  { %v240_v55 = vadd.f32 1.0, %v305_v54 }
 0x1fd   :  { %306 = vrcp.f32 %v240_v55 }
 0x207   :  { %v307_v56 = vpop.eup %306 }
 0x208   :  { %243 = vst [vmem:[#allocation2] sm:$0xff] %v307_v56 }
 0x209   :  { %319 = shalt.err (!%p316_p4)
}
 0x20a   :  { %s320_s21 = scalar_lea.hbm %s431_s7, 128 }
 0x20b   :  { %p321_p5 = scmp.ne.s32.totalorder %s431_s7, %s320_s21  ;;  %p324_p6 = scmp.lt.u32.totalorder %s320_s21, %s431_s7 }
 0x20d   :  { %p326_p7 = pnand %p324_p6, %p321_p5 }
 0x20f   :  { %329 = shalt.err (!%p326_p7)
}
 0x210   :  { %253 = dma.vmem_to_hbm [thread:$0]  %s251_s4, 128, %s431_s7, [#allocation3]  }
 0x211   :  { %330 = dma.done.wait [#allocation3], 128  }
 0x212   :  { %331 = vsyncadd [#allocation3], 4294967168 }
 0x213   :  { %257 = vsyncpa [#allocation3], 1 }

</bundles_post_ra>
